<compile_context>
chip_gen: v7x
topology: tpu7x:2x2x1
jax: 0.10.0
libtpu: 0.0.40
codegen_flags: <defaults>
</compile_context>

<pallas_src>
import functools

import jax
import jax.numpy as jnp
from jax import lax
from jax.experimental import pallas as pl
from jax.experimental.pallas import tpu as pltpu


def _round_up(a, b):
    return (a + b - 1) // b * b


def _cdiv(a, b):
    return (a + b - 1) // b


# ---------------------------------------------------------------------------
# Pallas kernel: fused (single-contraction) conv + bias + clamp(min, max)
# ---------------------------------------------------------------------------
def _conv_clamp_kernel(x_ref, halo_ref, w_ref, b_ref, o_ref, col_ref, *,
                       offsets, cmin, cmax):
    # x_ref    : (1, Cin, TILE_L)     bf16  flat padded-spatial chunk
    # halo_ref : (1, Cin, HALO_L)     bf16  next HALO_L flat elements (halo)
    # w_ref    : (Cout, KH*KW*Cin)    f32   folded weight matrix
    # b_ref    : (Cout, 1)            f32   bias column
    # o_ref    : (1, Cout, TILE_L)    out   lane-dense output tile
    # col_ref  : (KH*KW*Cin, TILE_L)  f32   mini-im2col scratch
    tile = x_ref.shape[-1]
    cin = x_ref.shape[1]

    x = x_ref[0].astype(jnp.float32)        # (Cin, TILE_L), cast once
    hal = halo_ref[0].astype(jnp.float32)   # (Cin, HALO_L)

    # Build the mini-im2col: row block k holds the window shifted by offsets[k].
    for k, off in enumerate(offsets):        # static unroll, KH*KW taps
        r = k * cin
        if off == 0:
            col_ref[r:r + cin, :] = x
        elif off < tile:
            col_ref[r:r + cin, :tile - off] = x[:, off:]
            col_ref[r:r + cin, tile - off:] = hal[:, :off]
        else:  # off == tile (only possible when tile == halo width)
            col_ref[r:r + cin, :] = hal[:, :tile]

    # One MXU contraction over K = KH*KW*Cin (replaces KH*KW tiny-K matmuls
    # plus KH*KW-1 full-tile VPU accumulation passes).
    acc = jnp.dot(w_ref[...], col_ref[...], preferred_element_type=jnp.float32)
    acc = jnp.clip(acc + b_ref[...], cmin, cmax)     # fused bias + clamp (f32)
    o_ref[0] = acc.astype(o_ref.dtype)


# ---------------------------------------------------------------------------
# Wrapper: NCHW conv2d (stride 1, 'same' padding) + clamp, via pallas_call
# ---------------------------------------------------------------------------
def conv2d_clamp(x_nchw, weight, bias, cmin, cmax, *, tile_l=None,
                 out_dtype=jnp.float32):
    """y = clamp(conv2d(x, weight, bias, stride=1, padding=same), cmin, cmax).

    x_nchw: (N, Cin, H, W)   weight: (Cout, Cin, KH, KW)   bias: (Cout,)
    returns (N, Cout, H, W) in `out_dtype` (f32 default to match the module).
    """
    N, Cin, H, W = x_nchw.shape
    Cout, Cin_w, KH, KW = weight.shape
    assert Cin_w == Cin and KH % 2 == 1 and KW % 2 == 1
    ph, pw = KH // 2, KW // 2
    Hp, Wp = H + 2 * ph, W + 2 * pw

    K = KH * KW * Cin
    assert K <= 1024, "single-fold path assumes a small contraction depth"

    # Flat "shifted matmul" geometry: output computed over p = h*Wp + w,
    # h in [0,H), w in [0,Wp); junk columns w in [W,Wp) are stripped at the end.
    l_out = H * Wp
    max_off = (KH - 1) * Wp + (KW - 1)
    halo_l = _round_up(max(max_off, 1), 128)

    # Generation-aware tile choice (bigger tiles on 128 MiB VMEM chips).
    if tile_l is None:
        try:
            vmem_cap = int(getattr(pltpu.get_tpu_info(), "vmem_capacity_bytes",
                                   64 << 20))
        except Exception:  # pragma: no cover - conservative fallback
            vmem_cap = 64 << 20
        tile_l = 2048 if vmem_cap >= (96 << 20) else 1024

    tile = _round_up(min(tile_l, l_out), halo_l)     # multiple of halo_l (and 128)
    # v7x has 2 TensorCores: make sure small problems still give >= ~4 grid steps.
    while N * _cdiv(l_out, tile) < 4 and tile > halo_l:
        tile -= halo_l
    num_tiles = _cdiv(l_out, tile)
    l_out_pad = num_tiles * tile
    l_in = l_out_pad + halo_l

    # Single fused pad (+ bf16 cast): SAME pad on W, and enough extra bottom rows
    # on H that the flat view already covers tile padding + halo (no second pad).
    rows_total = max(Hp, _cdiv(l_in, Wp))
    xp = jnp.pad(x_nchw, ((0, 0), (0, 0), (ph, rows_total - H - ph), (pw, pw)))
    xf = xp.astype(jnp.bfloat16).reshape(N, Cin, rows_total * Wp)

    # (Cout, Cin, KH, KW) -> (Cout, KH*KW*Cin); row order (ki, kj, cin) matches
    # the mini-im2col row order built in the kernel.
    w_flat = jnp.transpose(weight, (0, 2, 3, 1)).reshape(Cout, K)
    w_flat = w_flat.astype(jnp.float32)
    b_col = bias.reshape(Cout, 1).astype(jnp.float32)

    offsets = tuple(ki * Wp + kj for ki in range(KH) for kj in range(KW))
    halo_blocks_per_tile = tile // halo_l            # tile % halo_l == 0 by construction

    # VMEM budget (double-buffered ins/outs + scratch), capped at 32 MiB so it is
    # safe on v7x's 64 MiB physical VMEM as well as v5e/v6e.
    out_bytes = jnp.dtype(out_dtype).itemsize
    vmem_needed = (2 * Cin * tile * 2            # main chunk (bf16, 2 bufs)
                   + 2 * Cin * halo_l * 2        # halo chunk
                   + 2 * Cout * K * 4            # folded weights
                   + 2 * Cout * 4                # bias
                   + 2 * Cout * tile * out_bytes # output tile (2 bufs)
                   + K * tile * 4)               # mini-im2col scratch
    vmem_limit = int(min(max(2 * vmem_needed, 8 << 20), 32 << 20))

    kernel = functools.partial(_conv_clamp_kernel, offsets=offsets,
                               cmin=float(cmin), cmax=float(cmax))

    out_flat = pl.pallas_call(
        kernel,
        out_shape=jax.ShapeDtypeStruct((N, Cout, l_out_pad), out_dtype),
        grid_spec=pltpu.PrefetchScalarGridSpec(
            num_scalar_prefetch=0,
            grid=(N, num_tiles),
            in_specs=[
                pl.BlockSpec((1, Cin, tile), lambda n, t: (n, 0, t)),
                pl.BlockSpec((1, Cin, halo_l),
                             lambda n, t: (n, 0, (t + 1) * halo_blocks_per_tile)),
                pl.BlockSpec((Cout, K), lambda n, t: (0, 0)),
                pl.BlockSpec((Cout, 1), lambda n, t: (0, 0)),
            ],
            out_specs=pl.BlockSpec((1, Cout, tile), lambda n, t: (n, 0, t)),
            scratch_shapes=[pltpu.VMEM((K, tile), jnp.float32)],
        ),
        compiler_params=pltpu.CompilerParams(
            dimension_semantics=("parallel", "parallel"),
            vmem_limit_bytes=vmem_limit),
    )(xf, xf, w_flat, b_col)

    # TODO(synk): a fused consumer could take the padded (N, Cout, H, Wp) layout
    # directly and skip this strip (it is an extra read+write of the output in XLA).
    out = out_flat[:, :, :l_out].reshape(N, Cout, H, Wp)[:, :, :, :W]
    return out


# ---------------------------------------------------------------------------
# Reference (plain JAX) for a sanity check.
# ---------------------------------------------------------------------------
def conv2d_clamp_ref(x_nchw, weight, bias, cmin, cmax):
    y = lax.conv_general_dilated(
        x_nchw, weight, window_strides=(1, 1), padding="SAME",
        dimension_numbers=("NCHW", "OIHW", "NCHW"),
        precision=lax.Precision.HIGHEST)
    y = y + bias.reshape(1, -1, 1, 1)
    return jnp.clip(y, cmin, cmax)


if __name__ == "__main__":
    key = jax.random.PRNGKey(0)
    k_x, k_w, k_b = jax.random.split(key, 3)

    # Small shapes consistent with the (inferred) module: conv over NCHW input.
    N, Cin, H, W = 2, 4, 16, 16
    Cout, KH, KW = 8, 3, 3
    clamp_min, clamp_max = -0.5, 0.5

    x = jax.random.normal(k_x, (N, Cin, H, W), dtype=jnp.float32)
    weight = jax.random.normal(k_w, (Cout, Cin, KH, KW), dtype=jnp.float32) * 0.1
    bias = jax.random.normal(k_b, (Cout,), dtype=jnp.float32) * 0.1

    out = conv2d_clamp(x, weight, bias, clamp_min, clamp_max)
    out = jax.block_until_ready(out)

    # Fair reference: input rounded to bf16 like the kernel's input stream;
    # weights/bias/accumulation f32 (same as the kernel), highest precision.
    x_b = x.astype(jnp.bfloat16).astype(jnp.float32)
    ref = conv2d_clamp_ref(x_b, weight, bias, clamp_min, clamp_max)

    assert out.shape == (N, Cout, H, W)
    err = float(jnp.max(jnp.abs(out - ref)))
    assert err < 1e-3, f"max abs error {err}"
    print("KERNEL_OK")
</pallas_src>

<mosaic_0001>
module attributes {stable_mosaic.version = 11 : i64} {
  func.func @_conv_clamp_kernel(%arg0: i32, %arg1: i32, %arg2: memref<1x4x256xbf16, #tpu.memory_space<vmem>>, %arg3: memref<1x4x128xbf16, #tpu.memory_space<vmem>>, %arg4: memref<8x36xf32, #tpu.memory_space<vmem>>, %arg5: memref<8x1xf32, #tpu.memory_space<vmem>>, %arg6: memref<1x8x256xf32, #tpu.memory_space<vmem>>, %arg7: memref<36x256xf32, #tpu.memory_space<vmem>>) attributes {dimension_semantics = [#tpu.dimension_semantics<parallel>, #tpu.dimension_semantics<parallel>], iteration_bounds = array<i64: 2, 2>, scalar_prefetch = 0 : i64, scratch_operands = 1 : i64, tpu.core_type = #tpu.core_type<tc>, window_params = [{transform_indices = @transform_0, window_bounds = array<i64: 1, 4, 256>}, {transform_indices = @transform_1, window_bounds = array<i64: 1, 4, 128>}, {pipeline_mode = #tpu.pipeline_mode<synchronous>, transform_indices = @transform_2, window_bounds = array<i64: 8, 36>}, {pipeline_mode = #tpu.pipeline_mode<synchronous>, transform_indices = @transform_3, window_bounds = array<i64: 8, 1>}, {transform_indices = @transform_4, window_bounds = array<i64: 1, 8, 256>}]} {
    %c0 = arith.constant 0 : index
    %c0_0 = arith.constant 0 : index
    %c0_1 = arith.constant 0 : index
    %0 = vector.load %arg2[%c0, %c0_0, %c0_1] : memref<1x4x256xbf16, #tpu.memory_space<vmem>>, vector<1x4x256xbf16>
    %1 = vector.shape_cast %0 : vector<1x4x256xbf16> to vector<4x256xbf16>
    %2 = arith.extf %1 : vector<4x256xbf16> to vector<4x256xf32>
    %c0_2 = arith.constant 0 : index
    %c0_3 = arith.constant 0 : index
    %c0_4 = arith.constant 0 : index
    %3 = vector.load %arg3[%c0_2, %c0_3, %c0_4] : memref<1x4x128xbf16, #tpu.memory_space<vmem>>, vector<1x4x128xbf16>
    %4 = vector.shape_cast %3 : vector<1x4x128xbf16> to vector<4x128xbf16>
    %5 = arith.extf %4 : vector<4x128xbf16> to vector<4x128xf32>
    %c0_5 = arith.constant 0 : index
    %c0_6 = arith.constant 0 : index
    %6 = vector.load %arg7[%c0_5, %c0_6] : memref<36x256xf32, #tpu.memory_space<vmem>>, vector<4x256xf32>
    tpu.vector_store %arg7[%c0_5, %c0_6], %2 {strides = array<i32>} : memref<36x256xf32, #tpu.memory_space<vmem>>, vector<4x256xf32>,
    %7 = vector.extract_strided_slice %2 {offsets = [0, 1], sizes = [4, 255], strides = [1, 1]} : vector<4x256xf32> to vector<4x255xf32>
    %c4 = arith.constant 4 : index
    %c0_7 = arith.constant 0 : index
    %8 = vector.load %arg7[%c4, %c0_7] : memref<36x256xf32, #tpu.memory_space<vmem>>, vector<4x255xf32>
    tpu.vector_store %arg7[%c4, %c0_7], %7 {strides = array<i32>} : memref<36x256xf32, #tpu.memory_space<vmem>>, vector<4x255xf32>,
    %9 = vector.extract_strided_slice %5 {offsets = [0, 0], sizes = [4, 1], strides = [1, 1]} : vector<4x128xf32> to vector<4x1xf32>
    %c4_8 = arith.constant 4 : index
    %c255 = arith.constant 255 : index
    %10 = vector.load %arg7[%c4_8, %c255] : memref<36x256xf32, #tpu.memory_space<vmem>>, vector<4x1xf32>
    tpu.vector_store %arg7[%c4_8, %c255], %9 {strides = array<i32>} : memref<36x256xf32, #tpu.memory_space<vmem>>, vector<4x1xf32>,
    %11 = vector.extract_strided_slice %2 {offsets = [0, 2], sizes = [4, 254], strides = [1, 1]} : vector<4x256xf32> to vector<4x254xf32>
    %c8 = arith.constant 8 : index
    %c0_9 = arith.constant 0 : index
    %12 = vector.load %arg7[%c8, %c0_9] : memref<36x256xf32, #tpu.memory_space<vmem>>, vector<4x254xf32>
    tpu.vector_store %arg7[%c8, %c0_9], %11 {strides = array<i32>} : memref<36x256xf32, #tpu.memory_space<vmem>>, vector<4x254xf32>,
    %13 = vector.extract_strided_slice %5 {offsets = [0, 0], sizes = [4, 2], strides = [1, 1]} : vector<4x128xf32> to vector<4x2xf32>
    %c8_10 = arith.constant 8 : index
    %c254 = arith.constant 254 : index
    %14 = vector.load %arg7[%c8_10, %c254] : memref<36x256xf32, #tpu.memory_space<vmem>>, vector<4x2xf32>
    tpu.vector_store %arg7[%c8_10, %c254], %13 {strides = array<i32>} : memref<36x256xf32, #tpu.memory_space<vmem>>, vector<4x2xf32>,
    %15 = vector.extract_strided_slice %2 {offsets = [0, 18], sizes = [4, 238], strides = [1, 1]} : vector<4x256xf32> to vector<4x238xf32>
    %c12 = arith.constant 12 : index
    %c0_11 = arith.constant 0 : index
    %16 = vector.load %arg7[%c12, %c0_11] : memref<36x256xf32, #tpu.memory_space<vmem>>, vector<4x238xf32>
    tpu.vector_store %arg7[%c12, %c0_11], %15 {strides = array<i32>} : memref<36x256xf32, #tpu.memory_space<vmem>>, vector<4x238xf32>,
    %17 = vector.extract_strided_slice %5 {offsets = [0, 0], sizes = [4, 18], strides = [1, 1]} : vector<4x128xf32> to vector<4x18xf32>
    %c12_12 = arith.constant 12 : index
    %c238 = arith.constant 238 : index
    %18 = vector.load %arg7[%c12_12, %c238] : memref<36x256xf32, #tpu.memory_space<vmem>>, vector<4x18xf32>
    tpu.vector_store %arg7[%c12_12, %c238], %17 {strides = array<i32>} : memref<36x256xf32, #tpu.memory_space<vmem>>, vector<4x18xf32>,
    %19 = vector.extract_strided_slice %2 {offsets = [0, 19], sizes = [4, 237], strides = [1, 1]} : vector<4x256xf32> to vector<4x237xf32>
    %c16 = arith.constant 16 : index
    %c0_13 = arith.constant 0 : index
    %20 = vector.load %arg7[%c16, %c0_13] : memref<36x256xf32, #tpu.memory_space<vmem>>, vector<4x237xf32>
    tpu.vector_store %arg7[%c16, %c0_13], %19 {strides = array<i32>} : memref<36x256xf32, #tpu.memory_space<vmem>>, vector<4x237xf32>,
    %21 = vector.extract_strided_slice %5 {offsets = [0, 0], sizes = [4, 19], strides = [1, 1]} : vector<4x128xf32> to vector<4x19xf32>
    %c16_14 = arith.constant 16 : index
    %c237 = arith.constant 237 : index
    %22 = vector.load %arg7[%c16_14, %c237] : memref<36x256xf32, #tpu.memory_space<vmem>>, vector<4x19xf32>
    tpu.vector_store %arg7[%c16_14, %c237], %21 {strides = array<i32>} : memref<36x256xf32, #tpu.memory_space<vmem>>, vector<4x19xf32>,
    %23 = vector.extract_strided_slice %2 {offsets = [0, 20], sizes = [4, 236], strides = [1, 1]} : vector<4x256xf32> to vector<4x236xf32>
    %c20 = arith.constant 20 : index
    %c0_15 = arith.constant 0 : index
    %24 = vector.load %arg7[%c20, %c0_15] : memref<36x256xf32, #tpu.memory_space<vmem>>, vector<4x236xf32>
    tpu.vector_store %arg7[%c20, %c0_15], %23 {strides = array<i32>} : memref<36x256xf32, #tpu.memory_space<vmem>>, vector<4x236xf32>,
    %25 = vector.extract_strided_slice %5 {offsets = [0, 0], sizes = [4, 20], strides = [1, 1]} : vector<4x128xf32> to vector<4x20xf32>
    %c20_16 = arith.constant 20 : index
    %c236 = arith.constant 236 : index
    %26 = vector.load %arg7[%c20_16, %c236] : memref<36x256xf32, #tpu.memory_space<vmem>>, vector<4x20xf32>
    tpu.vector_store %arg7[%c20_16, %c236], %25 {strides = array<i32>} : memref<36x256xf32, #tpu.memory_space<vmem>>, vector<4x20xf32>,
    %27 = vector.extract_strided_slice %2 {offsets = [0, 36], sizes = [4, 220], strides = [1, 1]} : vector<4x256xf32> to vector<4x220xf32>
    %c24 = arith.constant 24 : index
    %c0_17 = arith.constant 0 : index
    %28 = vector.load %arg7[%c24, %c0_17] : memref<36x256xf32, #tpu.memory_space<vmem>>, vector<4x220xf32>
    tpu.vector_store %arg7[%c24, %c0_17], %27 {strides = array<i32>} : memref<36x256xf32, #tpu.memory_space<vmem>>, vector<4x220xf32>,
    %29 = vector.extract_strided_slice %5 {offsets = [0, 0], sizes = [4, 36], strides = [1, 1]} : vector<4x128xf32> to vector<4x36xf32>
    %c24_18 = arith.constant 24 : index
    %c220 = arith.constant 220 : index
    %30 = vector.load %arg7[%c24_18, %c220] : memref<36x256xf32, #tpu.memory_space<vmem>>, vector<4x36xf32>
    tpu.vector_store %arg7[%c24_18, %c220], %29 {strides = array<i32>} : memref<36x256xf32, #tpu.memory_space<vmem>>, vector<4x36xf32>,
    %31 = vector.extract_strided_slice %2 {offsets = [0, 37], sizes = [4, 219], strides = [1, 1]} : vector<4x256xf32> to vector<4x219xf32>
    %c28 = arith.constant 28 : index
    %c0_19 = arith.constant 0 : index
    %32 = vector.load %arg7[%c28, %c0_19] : memref<36x256xf32, #tpu.memory_space<vmem>>, vector<4x219xf32>
    tpu.vector_store %arg7[%c28, %c0_19], %31 {strides = array<i32>} : memref<36x256xf32, #tpu.memory_space<vmem>>, vector<4x219xf32>,
    %33 = vector.extract_strided_slice %5 {offsets = [0, 0], sizes = [4, 37], strides = [1, 1]} : vector<4x128xf32> to vector<4x37xf32>
    %c28_20 = arith.constant 28 : index
    %c219 = arith.constant 219 : index
    %34 = vector.load %arg7[%c28_20, %c219] : memref<36x256xf32, #tpu.memory_space<vmem>>, vector<4x37xf32>
    tpu.vector_store %arg7[%c28_20, %c219], %33 {strides = array<i32>} : memref<36x256xf32, #tpu.memory_space<vmem>>, vector<4x37xf32>,
    %35 = vector.extract_strided_slice %2 {offsets = [0, 38], sizes = [4, 218], strides = [1, 1]} : vector<4x256xf32> to vector<4x218xf32>
    %c32 = arith.constant 32 : index
    %c0_21 = arith.constant 0 : index
    %36 = vector.load %arg7[%c32, %c0_21] : memref<36x256xf32, #tpu.memory_space<vmem>>, vector<4x218xf32>
    tpu.vector_store %arg7[%c32, %c0_21], %35 {strides = array<i32>} : memref<36x256xf32, #tpu.memory_space<vmem>>, vector<4x218xf32>,
    %37 = vector.extract_strided_slice %5 {offsets = [0, 0], sizes = [4, 38], strides = [1, 1]} : vector<4x128xf32> to vector<4x38xf32>
    %c32_22 = arith.constant 32 : index
    %c218 = arith.constant 218 : index
    %38 = vector.load %arg7[%c32_22, %c218] : memref<36x256xf32, #tpu.memory_space<vmem>>, vector<4x38xf32>
    tpu.vector_store %arg7[%c32_22, %c218], %37 {strides = array<i32>} : memref<36x256xf32, #tpu.memory_space<vmem>>, vector<4x38xf32>,
    %c0_23 = arith.constant 0 : index
    %c0_24 = arith.constant 0 : index
    %39 = vector.load %arg4[%c0_23, %c0_24] : memref<8x36xf32, #tpu.memory_space<vmem>>, vector<8x36xf32>
    %c0_25 = arith.constant 0 : index
    %c0_26 = arith.constant 0 : index
    %40 = vector.load %arg7[%c0_25, %c0_26] : memref<36x256xf32, #tpu.memory_space<vmem>>, vector<36x256xf32>
    %cst = arith.constant dense<0.000000e+00> : vector<8x256xf32>
    %41 = tpu.matmul %39, %40, %cst {dimension_numbers = #tpu.dot_dimension_numbers<[1], [0], [0], [1], [0, 0, 1, 1], [], []>} : vector<8x36xf32>, vector<36x256xf32>, vector<8x256xf32> -> vector<8x256xf32>
    %c0_27 = arith.constant 0 : index
    %c0_28 = arith.constant 0 : index
    %42 = vector.load %arg5[%c0_27, %c0_28] : memref<8x1xf32, #tpu.memory_space<vmem>>, vector<8x1xf32>
    %43 = vector.broadcast %42 : vector<8x1xf32> to vector<8x256xf32>
    %44 = arith.addf %41, %43 : vector<8x256xf32>
    %cst_29 = arith.constant -5.000000e-01 : f32
    %cst_30 = arith.constant 5.000000e-01 : f32
    %45 = vector.broadcast %cst_29 : f32 to vector<8x256xf32>
    %46 = arith.maximumf %45, %44 : vector<8x256xf32>
    %47 = vector.broadcast %cst_30 : f32 to vector<8x256xf32>
    %48 = arith.minimumf %47, %46 : vector<8x256xf32>
    %c0_31 = arith.constant 0 : index
    %c0_32 = arith.constant 0 : index
    %c0_33 = arith.constant 0 : index
    %49 = vector.load %arg6[%c0_31, %c0_32, %c0_33] : memref<1x8x256xf32, #tpu.memory_space<vmem>>, vector<1x8x256xf32>
    %50 = vector.shape_cast %49 : vector<1x8x256xf32> to vector<8x256xf32>
    %51 = vector.shape_cast %48 : vector<8x256xf32> to vector<1x8x256xf32>
    tpu.vector_store %arg6[%c0_31, %c0_32, %c0_33], %51 {strides = array<i32>} : memref<1x8x256xf32, #tpu.memory_space<vmem>>, vector<1x8x256xf32>,
    return
  }
  func.func @transform_0(%arg0: i32, %arg1: i32) -> (i32, i32, i32) {
    %c0_i32 = arith.constant 0 : i32
    %c0_i32_0 = arith.constant 0 : i32
    return %arg0, %c0_i32, %arg1 : i32, i32, i32
  }
  func.func @transform_1(%arg0: i32, %arg1: i32) -> (i32, i32, i32) {
    %c1_i32 = arith.constant 1 : i32
    %0 = arith.addi %arg1, %c1_i32 : i32
    %c2_i32 = arith.constant 2 : i32
    %1 = arith.muli %0, %c2_i32 : i32
    %c0_i32 = arith.constant 0 : i32
    %c0_i32_0 = arith.constant 0 : i32
    return %arg0, %c0_i32, %1 : i32, i32, i32
  }
  func.func @transform_2(%arg0: i32, %arg1: i32) -> (i32, i32) {
    %c0_i32 = arith.constant 0 : i32
    %c0_i32_0 = arith.constant 0 : i32
    %c0_i32_1 = arith.constant 0 : i32
    return %c0_i32, %c0_i32_0 : i32, i32
  }
  func.func @transform_3(%arg0: i32, %arg1: i32) -> (i32, i32) {
    %c0_i32 = arith.constant 0 : i32
    %c0_i32_0 = arith.constant 0 : i32
    %c0_i32_1 = arith.constant 0 : i32
    return %c0_i32, %c0_i32_0 : i32, i32
  }
  func.func @transform_4(%arg0: i32, %arg1: i32) -> (i32, i32, i32) {
    %c0_i32 = arith.constant 0 : i32
    %c0_i32_0 = arith.constant 0 : i32
    return %arg0, %c0_i32, %arg1 : i32, i32, i32
  }
}

</mosaic_0001>

<bundles_post_ra>
// kernel: tpu_custom_call.1
= control target key start
LH: loop header
LB: loop body
LE: loop exit
PB: predicated region body
PF: predicated region fallthrough
CT: control target
= control target key end

     0   :  { %s1406_s0 = inlined_call_operand.hbm [shape: bf16[2,4,648], index: 0, kind: input, shape index: {}]   ;;  %s1407_s1 = inlined_call_operand.hbm [shape: bf16[2,4,648], index: 1, kind: input, shape index: {}]   ;;  %s1408_s2 = inlined_call_operand.vmem [shape: f32[8,36], index: 2, kind: input, shape index: {}]   ;;  %s1409_s3 = inlined_call_operand.vmem [shape: f32[8,1], index: 3, kind: input, shape index: {}]   ;;  %s1410_s4 = inlined_call_operand.hbm [shape: f32[2,8,512], index: 4, kind: output, shape index: {}]  }
   0x1   :  { %1420 = sst [smem:[#allocation16_spill]] %s1408_s2 }
   0x2   :  { %1421 = sst [smem:[#allocation17_spill]] %s1410_s4 }
   0x3   :  { %9 = vsyncpa [#allocation4], 0 }
   0x4   :  { %11 = vsyncpa [#allocation4 + $0x1], 0 }
   0x5   :  { %12 = vsyncpa [#allocation7], 0 }
   0x6   :  { %14 = vsyncpa [#allocation7 + $0x1], 0 }
   0x7   :  { %15 = vsyncpa [#allocation5], 0 }
   0x8   :  { %17 = vsyncpa [#allocation5 + $0x1], 0  ;;  %s1084_s15 = smov 0   ;;  %s1086_s16 = smov 0  }
   0x9   :  { %s1088_s17 = smov 0   ;;  %s1090_s18 = smov 0  }
   0xa   :  { %s1092_s19 = smov 0   ;;  %s1094_s20 = smov 0  }
   0xb   :  { %s1096_s21 = smov 0   ;;  %s1098_s22 = smov 0  }
   0xc   :  { %s1100_s23 = smov 0   ;;  %s1102_s24 = smov 0  }
   0xd   :  { %s1104_s25 = smov 0  }
   0xe LB: > { %1422 = sst [smem:[#allocation12_spill]] %s1032_s22  ;;  %s659_s26 = sadd.s32 4294967295, %s1044_s25   ;;  %s1044_s25 = sphi %s1104_s25, %s23_s25   ;;  %s1040_s24 = sphi %s1102_s24, %s1455_s24   ;;  %s1036_s23 = sphi %s1100_s23, %s1446_s23   ;;  %s1032_s22 = sphi %s1098_s22, %s1454_s22   ;;  %s1028_s21 = sphi %s1096_s21, %s1445_s21   ;;  %s1024_s20 = sphi %s1094_s20, %s1453_s20   ;;  %s1020_s19 = sphi %s1092_s19, %s1452_s19   ;;  %s1016_s18 = sphi %s1090_s18, %s1451_s18   ;;  %s1012_s17 = sphi %s1088_s17, %s1450_s17   ;;  %s1008_s16 = sphi %s1086_s16, %s1449_s16   ;;  %s1004_s15 = sphi %s1084_s15, %s1448_s15  }
   0xf   : > { %1423 = sst [smem:[#allocation13_spill]] %s1036_s23  ;;  %s660_s27 = sadd.s32 4294967294, %s1044_s25  }
  0x10   : > { %s32_s28 = sadd.s32 1, %s1036_s23  ;;  %s35_s29 = sadd.s32 1, %s1040_s24 }
  0x11   : > { %p33_p0 = scmp.ge.s32.totalorder %s32_s28, 2  ;;  %s44_s30 = sadd.s32 1, %s1024_s20 }
  0x12   : > { %p51_p1 = scmp.ne.s32.totalorder %s1024_s20, %s1020_s19  ;;  %p1416_p2 = scmp.eq.s32.totalorder %s1044_s25, 0 }
  0x13   : > { %s1457_s28 = smov (%p33_p0, %s32_s28), 0  ;;  %s1459_s29 = smov (!%p33_p0, %s35_s29), %s1040_s24 }
  0x14   : > { %1424 = sst [smem:[#allocation14_spill]] %s1457_s28  ;;  %s40_s5 = ssub.s32 %s1036_s23, %s1457_s28 }
  0x15   : > { %p1157_p3 = por %p1416_p2, %p51_p1  ;;  %p37_p4 = scmp.ge.s32.totalorder %s1459_s29, 2 }
  0x16   : > { %p57_p5 = scmp.ne.s32.totalorder %s1020_s19, %s1016_s18  ;;  %p1163_p6 = scmp.eq.s32.totalorder %s659_s26, 0 }
  0x17   : > { %s686_s8 = sshll.u32 %s1036_s23, 1  ;;  %s1461_s29 = smov (%p37_p4, %s1459_s29), 0 }
  0x18   : > { %1427 = sst [smem:[#allocation15_spill]] %s1461_s29  ;;  %p1175_p7 = por %p1163_p6, %p57_p5 }
  0x19   : > { %s687_s10 = sadd.s32 2, %s686_s8  ;;  %s39_s11 = ssub.s32 %s1040_s24, %s1461_s29 }
  0x1a   : > { %s1428_s9 = scalar_select %p1175_p7, 1, 0 }
  0x1b   : > { %s688_s12 = sshll.u32 %s1457_s28, 1  ;;  %s41_s13 = sor.u32 %s40_s5, %s39_s11 }
  0x1c   : > { %s689_s14 = sadd.s32 2, %s688_s12  ;;  %p42_p8 = scmp.eq.s32.totalorder %s41_s13, 0 }
  0x1d   : > { %s72_s23 = ssub.s32 %s687_s10, %s689_s14  ;;  %p157_p9 = scmp.eq.s32.totalorder %s659_s26, 3 }
  0x1e   : > { %s1182_s4 = sor.u32 %s72_s23, %s39_s11  ;;  %p163_p12 = scmp.eq.s32.totalorder %s660_s27, 3 }
  0x1f   : > { %s1185_s2 = scalar_select %p42_p8, %s1024_s20, %s44_s30  }
  0x20   : > { %p1191_p11 = por %p157_p9, %p51_p1  ;;  %p1415_p13 = scmp.lt.s32.totalorder %s1044_s25, 4 }
  0x21   : > { %s189_s29 = sand.u32 1, %s1024_s20   ;;  %p1200_p0 = por %p163_p12, %p57_p5 }
  0x22   : > { %s1429_s22 = scalar_select %p1191_p11, 1, 0 }
  0x23   : > { %s1430_s5 = scalar_select %p1200_p0, 1, 0 }
  0x24   : > { %s665_s23 = sshll.u32 %s189_s29, 2  ;;  %s698_s10 = smul.u32 6, %s1040_s24 }
  0x25   : > { %p1209_p4 = pnand %p1415_p13, %p1157_p3  ;;  %s193_s27 = scalar_lea.vmem [#allocation3], %s665_s23 }
  0x26   : > { %s1213_s30 = sadd.s32 %s698_s10, %s686_s8  ;;  %s203_s11 = sshll.u32 %s193_s27, 4  ;;  %s1216_s11 = int_to_ptr.vmem [resolvable:$true] %s203_s11 }
  0x27   : > { %s667_s12 = sshll.u32 %s1213_s30, 5  ;;  %s190_s28 = scalar_lea.sflag [#allocation4], %s189_s29 }
  0x28   : > { %s1223_s6 = scalar_lea.hbm %s1406_s0, %s667_s12  ;;  %p859_p3 = pneg %p1209_p4 }
  0x29   : > { %s857_s8 = scalar_lea.hbm %s1223_s6, 64  ;;  %s862_s27 = scalar_lea.hbm %s1406_s0, 384 }
  0x2a   : > { %p858_p1 = scmp.ne.s32.totalorder %s1223_s6, %s857_s8  ;;  %p863_p9 = scmp.lt.u32.totalorder %s1223_s6, %s1406_s0 }
  0x2b   : > { %p864_p12 = scmp.lt.u32.totalorder %s862_s27, %s857_s8  ;;  %p866_p2 = scmp.lt.u32.totalorder %s857_s8, %s1223_s6 }
  0x2c   : > { %p860_p5 = pnand %p859_p3, %p858_p1 }
  0x2d   : > { %p865_p13 = por %p864_p12, %p863_p9 }
  0x2e   : > { %p861_p8 = pneg %p860_p5 }
  0x2f   : > { %p867_p10 = por %p866_p2, %p865_p13 }
  0x31   : > { %p868_p0 = pnand %p867_p10, %p861_p8 }
  0x33   : > { %871 = shalt.err (!%p868_p0)
}
  0x34   : > { %s872_s29 = scalar_lea.vmem %s1216_s11, 64  ;;  %s1046_s23 = smov [#allocation3]  }
  0x35   : > { %p873_p1 = scmp.ne.s32.totalorder %s1216_s11, %s872_s29  ;;  %s877_s10 = sshll.u32 %s1046_s23, 4  ;;  %s878_s10 = int_to_ptr.vmem [resolvable:$false] %s877_s10 }
  0x36   : > { %s879_s13 = scalar_lea.vmem %s878_s10, 128  ;;  %p880_p7 = scmp.lt.s32.totalorder %s1216_s11, %s878_s10 }
  0x37   : > { %p875_p5 = pnand %p873_p1, %p859_p3  ;;  %p881_p9 = scmp.lt.s32.totalorder %s879_s13, %s872_s29 }
  0x39   : > { %p876_p11 = pneg %p875_p5  ;;  %p882_p12 = por %p881_p9, %p880_p7 }
  0x3b   : > { %p883_p2 = pnand %p882_p12, %p876_p11 }
  0x3d   : > { %886 = shalt.err (!%p883_p2)
}
  0x3e   : > { %708 = dma.hbm_to_vmem [thread:$0]  (!%p1209_p4), %s1223_s6, 64, %s1216_s11, %s190_s28  }
  0x3f   : > { %p671_p7 = scmp.ge.s32.totalorder %s1044_s25, 1  ;;  %p230_p10 = scmp.lt.s32.totalorder %s1044_s25, 5 }
  0x40   : > { %s76_s8 = sadd.s32 1, %s1012_s17  ;;  %p1433_p13 = scmp.eq.s32.totalorder %s1182_s4, 0 }
  0x41   : > { %p1252_p11 = pnand %p671_p7, %p230_p10  ;;  %p83_p0 = scmp.ne.s32.totalorder %s1012_s17, %s1008_s16 }
  0x42   : > { %s1260_s27 = scalar_select %p1433_p13, %s1012_s17, %s76_s8  }
  0x43   : > { %p89_p3 = scmp.ne.s32.totalorder %s1008_s16, %s1004_s15  ;;  %s210_s14 = sand.u32 1, %s1012_s17  }
  0x44   : > { %s587_s10 = scalar_lea.hbm %s1407_s1, %s667_s12  ;;  %p1434_p4 = scmp.eq.s32.totalorder %s1044_s25, 0 }
  0x45   : > { %p1276_p1 = por %p89_p3, %p1163_p6  ;;  %s668_s11 = sshll.u32 %s210_s14, 1 }
  0x46   : > { %p85_p8 = por %p83_p0, %p1434_p4  ;;  %s1280_s6 = scalar_lea.hbm %s587_s10, 64 }
  0x47   : > { %s1435_s28 = scalar_select %p1276_p1, 1, 0 }
  0x48   : > { %s214_s4 = scalar_lea.vmem [#allocation6], %s668_s11  ;;  %p1436_p5 = scmp.lt.s32.totalorder %s1044_s25, 4 }
  0x49   : > { %s225_s15 = sshll.u32 %s214_s4, 4  ;;  %s211_s7 = scalar_lea.sflag [#allocation7], %s210_s14  ;;  %s1288_s15 = int_to_ptr.vmem [resolvable:$true] %s225_s15 }
  0x4a   : > { %p1284_p9 = pnand %p1436_p5, %p85_p8  ;;  %s917_s12 = scalar_lea.hbm %s587_s10, 96 }
  0x4b   : > { %p888_p6 = scmp.ne.s32.totalorder %s1280_s6, %s917_s12  ;;  %s892_s29 = scalar_lea.hbm %s1407_s1, 384 }
  0x4c   : > { %p889_p12 = pneg %p1284_p9  ;;  %p893_p10 = scmp.lt.u32.totalorder %s1280_s6, %s1407_s1 }
  0x4d   : > { %p894_p13 = scmp.lt.u32.totalorder %s892_s29, %s917_s12  ;;  %p896_p3 = scmp.lt.u32.totalorder %s917_s12, %s1280_s6 }
  0x4e   : > { %p890_p2 = pnand %p889_p12, %p888_p6 }
  0x4f   : > { %p895_p0 = por %p894_p13, %p893_p10 }
  0x50   : > { %p891_p7 = pneg %p890_p2 }
  0x51   : > { %p897_p4 = por %p896_p3, %p895_p0 }
  0x53   : > { %p898_p8 = pnand %p897_p4, %p891_p7 }
  0x55   : > { %901 = shalt.err (!%p898_p8)
}
  0x56   : > { %s902_s14 = scalar_lea.vmem %s1288_s15, 32  ;;  %s1047_s10 = smov [#allocation6]  }
  0x57   : > { %p903_p5 = scmp.ne.s32.totalorder %s1288_s15, %s902_s14  ;;  %s907_s4 = sshll.u32 %s1047_s10, 4  ;;  %s908_s4 = int_to_ptr.vmem [resolvable:$false] %s907_s4 }
  0x58   : > { %s909_s13 = scalar_lea.vmem %s908_s4, 64  ;;  %p910_p1 = scmp.lt.s32.totalorder %s1288_s15, %s908_s4 }
  0x59   : > { %p905_p6 = pnand %p903_p5, %p889_p12  ;;  %p911_p10 = scmp.lt.s32.totalorder %s909_s13, %s902_s14 }
  0x5b   : > { %p906_p2 = pneg %p905_p6  ;;  %p912_p13 = por %p911_p10, %p910_p1 }
  0x5d   : > { %p913_p0 = pnand %p912_p13, %p906_p2 }
  0x5f   : > { %916 = shalt.err (!%p913_p0)
}
  0x60   : > { %711 = dma.hbm_to_vmem [thread:$0]  (!%p1284_p9), %s1280_s6, 32, %s1288_s15, %s211_s7  }
  0x61   : > { %234 = sbr.rel (%p1252_p11) target bundleno = 502 (0x1f6), region = 36  ;;  %s1317_s12 = sand.u32 (!%p1252_p11), 1, %s1020_s19  }
  0x62   : > { %s672_s8 = sshll.u32 (!%p1252_p11), %s1317_s12, 2  ;;  %s237_s29 = scalar_lea.sflag (!%p1252_p11), [#allocation4], %s1317_s12 }
  0x63   : > { %s240_s23 = scalar_lea.vmem (!%p1252_p11), [#allocation3], %s672_s8  ;;  %p1438_p1 = scmp.ne.s32.totalorder (!%p1252_p11), %s1428_s9, 0 }
  0x68   : > { %991 = dma.done.wait (%p1438_p1), %s237_s29, 64  }
  0x69   : > { %993 = vsyncadd (%p1438_p1), %s237_s29, 4294967232  ;;  %s245_s6 = sand.u32 1, %s1008_s16   ;;  %p1439_p11 = scmp.ne.s32.totalorder %s1435_s28, 0 }
  0x6a   : > { %s673_s15 = sshll.u32 %s245_s6, 1  ;;  %s246_s26 = scalar_lea.sflag [#allocation7], %s245_s6 }
  0x6b   : > { %s249_s30 = scalar_lea.vmem [#allocation6], %s673_s15 }
  0x6c   : > { %995 = dma.done.wait (%p1439_p11), %s246_s26, 32  }
  0x6d   : > { %997 = vsyncadd (%p1439_p11), %s246_s26, 4294967264  ;;  %v285_v0 = vld [vmem:[%s249_s30] sm:$0x3]  ;;  %v283_v1 = vld [vmem:[%s240_s23] sm:$0xf]  ;;  %s1048_s7 = smov 126  }
  0x6e   : > { %v286_v2 = vunpack.c.l.bf16 %v285_v0  ;;  %v284_v3 = vunpack.c.l.bf16 %v283_v1  ;;  %s1049_s9 = smov 110   ;;  %s1050_s11 = smov 127   ;;  %v1056_v9 = vmov 0.0   ;;  %v434_v10 = vld [vmem:[%s1409_s3] sm:$0xff]  ;;  %v1057_v11 = vmov 0  }
  0x6f   : > { %s1051_s28 = smov 109   ;;  %s1052_s14 = smov 108   ;;  %515 = vmatprep.mubr.f32.mxu0 %v1056_v9  ;;  %856 = vset.pattern.permute.xlu0 %v1057_v11  ;;  %vm331_vm0 = vcmask 900096   ;;  %vm336_vm1 = vcmask 900100   ;;  %vm297_vm2 = vcmask 1039360   ;;  %vm302_vm3 = vcmask 1039364  }
  0x70   : > { %322 = vrot.lane.b32.xlu0 %v286_v2, %s1048_s7  ;;  %v292_v4 = vcombine.low %v284_v3, %v284_v3  ;;  %290 = vst [vmem:[#allocation2] sm:$0xf] %v284_v3  ;;  %v288_v5 = vcombine.high %v284_v3, %v284_v3  ;;  %v305_v7 = vcombine.low %v286_v2, %v286_v2  ;;  %s1053_s10 = smov 92   ;;  %s1054_s4 = smov 91   ;;  %vm309_vm4 = vcmask 1048572  }
  0x71   : > { %s1055_s13 = smov 90   ;;  %vm315_vm5 = vcmask 1031168   ;;  %vm320_vm6 = vcmask 1027072   ;;  %vm325_vm7 = vcmask 1044464   ;;  %vm341_vm8 = vcmask 1048436   ;;  %s1440_s23 = sld [smem:[#allocation12_spill]] }
  0x72   : > { %v826_v6 = vpack.i.bf16 %v292_v4, %v284_v3  ;;  %291 = vst [vmem:[#allocation2 + $0x8] sm:$0xf] %v288_v5  ;;  %v821_v8 = vpack.i.bf16 %v284_v3, %v288_v5  ;;  %vm347_vm9 = vcmask 891904   ;;  %vm352_vm10 = vcmask 887808   ;;  %s1441_s26 = sld [smem:[#allocation16_spill]]  ;;  %s674_s30 = sshll.u32 %s1317_s12, 4 }
  0x73   : > { %vm363_vm11 = vcmask 883712   ;;  %vm368_vm12 = vcmask 883716   ;;  %vm379_vm13 = vcmask 752640   ;;  %vm384_vm14 = vcmask 748544   ;;  %s1442_s8 = sld [smem:[#allocation17_spill]]  ;;  %p1443_p12 = scmp.ne.s32.totalorder %s1429_s22, 0 }
  0x74   : > { %827 = vrot.lane.b32.xlu1 %v826_v6, %s1049_s9  ;;  %817 = vrot.lane.b32.xlu0 %v826_v6, %s1050_s11  ;;  %vm357_vm15 = vcmask 1044328   ;;  %s1058_s6 = smov [#allocation8]  }
  0x75   : > { %s922_s15 = sshll.u32 %s1058_s6, 4  ;;  %s923_s15 = int_to_ptr.vmem [resolvable:$false] %s922_s15 }
  0x78   : > { %306 = vrot.lane.b32.xlu1 %v305_v7, %s1050_s11  ;;  %822 = vrot.lane.b32.xlu0 %v821_v8, %s1048_s7  ;;  %s681_s7 = sshll.u32 %s1028_s21, 1  ;;  %s529_s21 = scalar_lea.sflag [#allocation5], %s1317_s12 }
  0x7c   : > { %338 = vrot.lane.b32.xlu1 %v305_v7, %s1049_s9  ;;  %832 = vrot.lane.b32.xlu0 %v821_v8, %s1051_s28  ;;  %s682_s9 = sshll.u32 %s1440_s23, 2 }
  0x7d   : > { %s541_s11 = sadd.s32 %s682_s9, %s681_s7 }
  0x80   : > { %837 = vrot.lane.b32.xlu1 %v826_v6, %s1052_s14  ;;  %842 = vrot.lane.b32.xlu0 %v821_v8, %s1053_s10 }
  0x84   : > { %847 = vrot.lane.b32.xlu1 %v826_v6, %s1054_s4  ;;  %354 = vrot.lane.b32.xlu0 %v286_v2, %s1051_s28  ;;  %s683_s28 = sshll.u32 %s541_s11, 7 }
  0x85   : > { %s1343_s29 = scalar_lea.hbm %s1442_s8, %s683_s28 }
  0x88   : > { %370 = vrot.lane.b32.xlu1 %v305_v7, %s1052_s14  ;;  %386 = vrot.lane.b32.xlu0 %v286_v2, %s1053_s10  ;;  %s278_s14 = scalar_lea.vmem [#allocation8], %s674_s30 }
  0x89   : > { %s545_s10 = sshll.u32 %s278_s14, 4  ;;  %s1345_s10 = int_to_ptr.vmem [resolvable:$true] %s545_s10 }
  0x8a   : > { %s918_s23 = scalar_lea.vmem %s1345_s10, 256  ;;  %p925_p4 = scmp.lt.s32.totalorder %s1345_s10, %s923_s15 }
  0x8b   : > { %p919_p9 = scmp.ne.s32.totalorder %s1345_s10, %s918_s23 }
  0x8c   : > { %402 = vrot.lane.b32.xlu1 %v305_v7, %s1054_s4  ;;  %852 = vrot.lane.b32.xlu0 %v821_v8, %s1055_s13 }
  0x8d   : > { %p920_p7 = pnand %p919_p9, %p1443_p12 }
  0x8f   : > { %p921_p3 = pneg %p920_p7 }
  0x90   : > { %418 = vrot.lane.b32.xlu1 %v286_v2, %s1055_s13  ;;  %437 = vperm.xlu0 %856, %v434_v10   ;;  %v423_v2 = vld [vmem:[%s1441_s26] sm:$0xff]  ;;  %s924_s26 = scalar_lea.vmem %s923_s15, 512 }
  0x91   : > { %p926_p8 = scmp.lt.s32.totalorder %s924_s26, %s918_s23 }
  0x93   : > { %p927_p5 = por %p926_p8, %p925_p4 }
  0x95   : > { %p928_p6 = pnand %p927_p5, %p921_p3 }
  0xe2   : > { %v323_v12 = vpop.permute.xlu0 %322 }
  0xe6   : > { %v828_v13 = vpop.permute.xlu1 %827  ;;  %v818_v14 = vpop.permute.xlu0 %817 }
  0xe7   : > { %v830_v15 = vunpack.i.h.bf16 %v828_v13  ;;  %v829_v16 = vunpack.i.l.bf16 %v828_v13  ;;  %v820_v17 = vunpack.i.h.bf16 %v818_v14  ;;  %v819_v18 = vunpack.i.l.bf16 %v818_v14 }
  0xe9   : > { %v332_v19 = vsel %vm331_vm0, %v830_v15, %v829_v16  ;;  %337 = vst.msk [vmem:[#allocation2 + $0x18] sm:$0xf0] %vm336_vm1, %v829_v16  ;;  %v298_v20 = vsel %vm297_vm2, %v820_v17, %v819_v18  ;;  %vm395_vm0 = vcmask 744448   ;;  %vm400_vm1 = vcmask 744452  }
  0xea   : > { %303 = vst.msk [vmem:[#allocation2 + $0x8] sm:$0xf0] %vm302_vm3, %v819_v18  ;;  %335 = vst [vmem:[#allocation2 + $0x10] sm:$0xf0] %v332_v19  ;;  %v307_v21 = vpop.permute.xlu1 %306  ;;  %v823_v22 = vpop.permute.xlu0 %822  ;;  %vm373_vm2 = vcmask 1048420   ;;  %vm389_vm3 = vcmask 1044192  }
  0xeb   : > { %301 = vst [vmem:[#allocation2] sm:$0xf0] %v298_v20  ;;  %310 = vst.msk [vmem:[#allocation2 + $0x8] sm:$0xf0] %vm309_vm4, %v307_v21  ;;  %v825_v23 = vunpack.i.h.bf16 %v823_v22  ;;  %v824_v24 = vunpack.i.l.bf16 %v823_v22  ;;  %vm405_vm4 = vcmask 1048284  }
  0xed   : > { %v316_v25 = vsel %vm315_vm5, %v825_v23, %v824_v24  ;;  %321 = vst.msk [vmem:[#allocation2 + $0x18] sm:$0xf] %vm320_vm6, %v824_v24  ;;  %vm411_vm5 = vcmask 736256   ;;  %vm416_vm6 = vcmask 732160  }
  0xee   : > { %319 = vst [vmem:[#allocation2 + $0x10] sm:$0xf] %v316_v25  ;;  %326 = vst.msk [vmem:[#allocation2 + $0x18] sm:$0xf] %vm325_vm7, %v323_v12  ;;  %v339_v26 = vpop.permute.xlu1 %338  ;;  %v833_v27 = vpop.permute.xlu0 %832  ;;  %vm421_vm7 = vcmask 1044176  }
  0xef   : > { %342 = vst.msk [vmem:[#allocation2 + $0x18] sm:$0xf0] %vm341_vm8, %v339_v26  ;;  %v835_v28 = vunpack.i.h.bf16 %v833_v27  ;;  %v834_v29 = vunpack.i.l.bf16 %v833_v27  ;;  %vm444_vm8 = vcmask 1043456  }
  0xf1   : > { %v348_v30 = vsel %vm347_vm9, %v835_v28, %v834_v29  ;;  %353 = vst.msk [vmem:[#allocation2 + $0x28] sm:$0xf] %vm352_vm10, %v834_v29  ;;  %vm440_vm9 = vcmask 293888  }
  0xf2   : > { %351 = vst [vmem:[#allocation2 + $0x20] sm:$0xf] %v348_v30  ;;  %v838_v31 = vpop.permute.xlu1 %837  ;;  %v843_v32 = vpop.permute.xlu0 %842  ;;  %v424_v39 = vld [vmem:[#allocation2] sm:$0xff]  ;;  %v425_v43 = vld [vmem:[#allocation2 + $0x8] sm:$0xff] }
  0xf3   : > { %v840_v33 = vunpack.i.h.bf16 %v838_v31  ;;  %v839_v34 = vunpack.i.l.bf16 %v838_v31  ;;  %v845_v35 = vunpack.i.h.bf16 %v843_v32  ;;  %v844_v36 = vunpack.i.l.bf16 %v843_v32 }
  0xf5   : > { %v364_v37 = vsel %vm363_vm11, %v840_v33, %v839_v34  ;;  %369 = vst.msk [vmem:[#allocation2 + $0x28] sm:$0xf0] %vm368_vm12, %v839_v34  ;;  %v380_v38 = vsel %vm379_vm13, %v845_v35, %v844_v36  ;;  %v426_v40 = vld [vmem:[#allocation2 + $0x10] sm:$0xff] }
  0xf6   : > { %385 = vst.msk [vmem:[#allocation2 + $0x38] sm:$0xf] %vm384_vm14, %v844_v36  ;;  %367 = vst [vmem:[#allocation2 + $0x20] sm:$0xf0] %v364_v37  ;;  %v848_v41 = vpop.permute.xlu1 %847  ;;  %v355_v42 = vpop.permute.xlu0 %354  ;;  %v427_v44 = vld [vmem:[#allocation2 + $0x18] sm:$0xff]  ;;  %v692_v48 = vpack.c.bf16 %v426_v40, %v424_v39 }
  0xf7   : > { %383 = vst [vmem:[#allocation2 + $0x30] sm:$0xf] %v380_v38  ;;  %v850_v45 = vunpack.i.h.bf16 %v848_v41  ;;  %v849_v46 = vunpack.i.l.bf16 %v848_v41  ;;  %358 = vst.msk [vmem:[#allocation2 + $0x28] sm:$0xf] %vm357_vm15, %v355_v42  ;;  %v690_v47 = vpack.c.bf16 %v427_v44, %v425_v43 }
  0xf9   : > { %v396_v49 = vsel %vm395_vm0, %v850_v45, %v849_v46  ;;  %401 = vst.msk [vmem:[#allocation2 + $0x38] sm:$0xf0] %vm400_vm1, %v849_v46  ;;  %691 = vmatprep.subr.bf16.mxu0 %v690_v47 }
  0xfa   : > { %399 = vst [vmem:[#allocation2 + $0x30] sm:$0xf0] %v396_v49  ;;  %v371_v50 = vpop.permute.xlu1 %370  ;;  %693 = vmatpush1.bf16.msra.mxu0 %v692_v48  ;;  %v387_v51 = vpop.permute.xlu0 %386 }
  0xfb   : > { %374 = vst.msk [vmem:[#allocation2 + $0x28] sm:$0xf0] %vm373_vm2, %v371_v50 }
  0xfc   : > { %390 = vst.msk [vmem:[#allocation2 + $0x38] sm:$0xf] %vm389_vm3, %v387_v51 }
  0xfd   : > { %v428_v62 = vld [vmem:[#allocation2 + $0x20] sm:$0xff] }
  0xfe   : > { %v403_v52 = vpop.permute.xlu1 %402  ;;  %v853_v53 = vpop.permute.xlu0 %852 }
  0xff   : > { %406 = vst.msk [vmem:[#allocation2 + $0x38] sm:$0xf0] %vm405_vm4, %v403_v52  ;;  %v855_v54 = vunpack.i.h.bf16 %v853_v53  ;;  %v854_v55 = vunpack.i.l.bf16 %v853_v53 }
 0x101   : > { %v412_v56 = vsel %vm411_vm5, %v855_v54, %v854_v55  ;;  %417 = vst.msk [vmem:[#allocation2 + $0x48] sm:$0xf] %vm416_vm6, %v854_v55  ;;  %v430_v58 = vld [vmem:[#allocation2 + $0x30] sm:$0xff] }
 0x102   : > { %415 = vst [vmem:[#allocation2 + $0x40] sm:$0xf] %v412_v56  ;;  %v419_v57 = vpop.permute.xlu1 %418  ;;  %v429_v59 = vld [vmem:[#allocation2 + $0x28] sm:$0xff]  ;;  %v696_v63 = vpack.c.bf16 %v430_v58, %v428_v62 }
 0x103   : > { %422 = vst.msk [vmem:[#allocation2 + $0x48] sm:$0xf] %vm421_vm7, %v419_v57 }
 0x106   : > { %v431_v60 = vld [vmem:[#allocation2 + $0x38] sm:$0xff] }
 0x107   : > { %v694_v61 = vpack.c.bf16 %v431_v60, %v429_v59 }
 0x109   : > { %695 = vmatprep.subr.bf16.mxu0 %v694_v61  ;;  %v432_v1 = vld [vmem:[#allocation2 + $0x40] sm:$0xf] }
 0x10a   : > { %697 = vmatpush1.bf16.msra.mxu0 %v696_v63  ;;  %v433_v0 = vld [vmem:[#allocation2 + $0x48] sm:$0xf] }
 0x10b   : > { %675 = vmatprep.subr.msk.mxu0 %vm444_vm8, %v433_v0 }
 0x10e   : > { %676 = vmatpush1.msk.msra.mxu0 %vm444_vm8, %v432_v1 }
 0x10f   : > { %677 = vmatmul.mubr.msk.f32.vlgmr.msra.gmra.mrb[0].mxu0 %vm440_vm9, %v423_v2  ;;  %v438_v3 = vpop.permute.xlu0 %437 }
 0x1e2   : > { %v517_v4 = vpop.f32.mrb[0].mxu0 }
 0x1e3   : > { %v518_v5 = vadd.f32 %v517_v4, %v438_v3  ;;  %v519_v6 = vpop.f32.mrb[1].mxu0 }
 0x1e4   : > { %v520_v7 = vadd.f32 %v519_v6, %v438_v3 }
 0x1e5   : > { %v678_v8 = vclamps-f32 %v518_v5, 0.5 }
 0x1e6   : > { %v679_v9 = vclamps-f32 %v520_v7, 0.5 }
 0x1e7   : > { %526 = vst [vmem:[%s278_s14] sm:$0xff] %v678_v8 }
 0x1e8   : > { %527 = vst [vmem:[%s278_s14 + $0x8] sm:$0xff] %v679_v9 }
 0x1e9   : > { %931 = shalt.err (!%p928_p6)
}
 0x1ea   : > { %s932_s12 = scalar_lea.hbm %s1343_s29, 256  ;;  %s936_s9 = scalar_lea.hbm %s1442_s8, 1024 }
 0x1eb   : > { %p933_p2 = scmp.ne.s32.totalorder %s1343_s29, %s932_s12  ;;  %p937_p0 = scmp.lt.u32.totalorder %s1343_s29, %s1442_s8 }
 0x1ec   : > { %p938_p1 = scmp.lt.u32.totalorder %s936_s9, %s932_s12  ;;  %p940_p9 = scmp.lt.u32.totalorder %s932_s12, %s1343_s29 }
 0x1ed   : > { %p934_p10 = pnand %p933_p2, %p1443_p12 }
 0x1ee   : > { %p939_p11 = por %p938_p1, %p937_p0 }
 0x1ef   : > { %p935_p13 = pneg %p934_p10 }
 0x1f0   : > { %p941_p7 = por %p940_p9, %p939_p11 }
 0x1f2   : > { %p942_p3 = pnand %p941_p7, %p935_p13 }
 0x1f4   : > { %945 = shalt.err (!%p942_p3)
}
 0x1f5   : > { %703 = dma.vmem_to_hbm [thread:$0]  (%p1443_p12), %s1345_s10, 256, %s1343_s29, %s529_s21  }
 0x1f6 PF: > { %p717_p4 = scmp.ge.s32.totalorder %s1044_s25, 2  ;;  %s557_s14 = sand.u32 1, %s1016_s18  }
 0x1f7   : > { %p1444_p8 = scmp.ne.s32.totalorder %s1430_s5, 0  ;;  %s558_s4 = scalar_lea.sflag [#allocation5], %s557_s14 }
 0x1f9   : > { %p713_p5 = pnand %p717_p4, %p1444_p8 }
 0x1fb   : > { %999 = dma.done.wait (!%p713_p5), %s558_s4, 256  }
 0x1fc   : > { %1001 = vsyncadd (!%p713_p5), %s558_s4, 4294967040  ;;  %s23_s25 = sadd.s32 1, %s1044_s25   ;;  %s1445_s21 = sld [smem:[#allocation13_spill]] }
 0x1fd   : > { %p20_p6 = scmp.ge.s32.totalorder %s23_s25, 6   ;;  %s1446_s23 = sld [smem:[#allocation14_spill]] }
 0x1fe   : > { %s1447_s10 = sld [smem:[#allocation15_spill]]  ;;  %s1448_s15 = smov %s1008_s16 }
 0x1ff   : > { %s1449_s16 = smov %s1012_s17  ;;  %s1450_s17 = smov %s1260_s27 }
 0x200   : > { %s1451_s18 = smov %s1020_s19  ;;  %s1452_s19 = smov %s1024_s20 }
 0x201   : > { %s1453_s20 = smov %s1185_s2  ;;  %s1454_s22 = smov %s1040_s24 }
 0x202   :  { %22 = sbr.rel (!%p20_p6) target bundleno = 14 (0xe), region = 94 }
 0x204   : > { %s1455_s24 = smov %s1447_s10 }
 0x209   :  { %563 = vsyncpa [#allocation4], 1 }
 0x20a   :  { %565 = vsyncpa [#allocation4 + $0x1], 1 }
 0x20b   :  { %566 = vsyncpa [#allocation7], 1 }
 0x20c   :  { %568 = vsyncpa [#allocation7 + $0x1], 1 }
 0x20d   :  { %569 = vsyncpa [#allocation5], 1 }
 0x20e   :  { %571 = vsyncpa [#allocation5 + $0x1], 1 }

</bundles_post_ra>
